<compile_context>
chip_gen: v7x
topology: tpu7x:2x2x1
jax: 0.10.0
libtpu: 0.0.40
codegen_flags: <defaults>
</compile_context>

<pallas_src>
import functools
from typing import NamedTuple

import jax
import jax.numpy as jnp
from jax.experimental import pallas as pl
from jax.experimental.pallas import tpu as pltpu


def _round_up(v: int, m: int) -> int:
    return (v + m - 1) // m * m


def _pick_b_tile(B: int) -> int:
    """Batch-tile rows: multiple of 8, capped at 512 (fits MXU M on all gens)."""
    if B <= 512:
        return _round_up(B, 8)
    return 512


# -----------------------------------------------------------------------------
# Fused GRU layer-stack kernel
# -----------------------------------------------------------------------------
def _make_gru_stack_kernel(Hp: int, p: float, num_layers: int):
    """grid=(num_b_tiles, num_layers); one grid step == one GRU layer on one
    batch tile.

    Refs (after the scalar-prefetch seed):
      x_ref  : (B_TILE, In_pad)             bf16   layer-0 input tile
      h_ref  : (1, B_TILE, Hp)              f32    this layer's previous hidden
      wx_ref : (L, In_pad, 3*Hp)            bf16   resident, index with layer
      wh_ref : (L, Hp,     3*Hp)            bf16   resident, index with layer
      bx_ref : (1, 1, 3*Hp)                 f32    streamed per layer
      bh_ref : (1, 1, 3*Hp)                 f32    streamed per layer
      out_ref: (1, B_TILE, Hp)              f32    this layer's new hidden
      xbuf   : (B_TILE, In_pad)             bf16   persistent carry scratch
    """

    def kernel(seed_ref, x_ref, h_ref, wx_ref, wh_ref, bx_ref, bh_ref,
               out_ref, xbuf):
        b = pl.program_id(0)
        layer = pl.program_id(1)

        @pl.when(layer == 0)
        def _():
            # (Re)initialise the carry buffer for this batch tile.
            xbuf[...] = x_ref[...]
            if p > 0.0:
                # Fold the batch-tile id into the seed so tiles draw
                # independent dropout masks.
                pltpu.prng_seed(seed_ref[0] * pl.num_programs(0) + b)

        h = h_ref[0]                                   # (B_TILE, Hp) f32

        # Two MXU matmuls per layer (split weights -> no zero gate blocks).
        gx = jnp.dot(xbuf[...], wx_ref[layer],
                     preferred_element_type=jnp.float32) + bx_ref[0]
        gh = jnp.dot(h.astype(jnp.bfloat16), wh_ref[layer],
                     preferred_element_type=jnp.float32) + bh_ref[0]

        r = jax.nn.sigmoid(gx[:, :Hp] + gh[:, :Hp])          # lane-aligned
        z = jax.nn.sigmoid(gx[:, Hp:2 * Hp] + gh[:, Hp:2 * Hp])
        n = jnp.tanh(gx[:, 2 * Hp:] + r * gh[:, 2 * Hp:])
        hy = n + z * (h - n)

        if p > 0.0:
            # Matches the spec's GRU: F.dropout on the stored hidden/output.
            # TODO(synk): TPU PRNG dropout cannot bitwise-match torch's RNG.
            bits = pltpu.bitcast(pltpu.prng_random_bits(hy.shape), jnp.uint32)
            u = (bits >> jnp.uint32(9)).astype(jnp.float32) * (1.0 / float(1 << 23))
            hy = jnp.where(u >= jnp.float32(p), hy * (1.0 / (1.0 - p)), 0.0)

        out_ref[0] = hy

        # Carry this layer's (post-dropout) output as the next layer's input.
        # Columns >= Hp of xbuf keep layer-0 x values, but the matching weight
        # rows are zero for layers > 0, so they contribute nothing.  The last
        # layer's carry is dead -> skip the store.
        @pl.when(layer < num_layers - 1)
        def _():
            xbuf[:, :Hp] = hy.astype(xbuf.dtype)

    return kernel


def _vmem_limit_bytes(b_tile: int, In_pad: int, Hp: int, num_layers: int) -> int:
    # Resident weights (budget x2 in case Mosaic still double-buffers them).
    weights = 2 * num_layers * (In_pad + Hp) * 3 * Hp * 2
    biases = 2 * 2 * 3 * Hp * 4
    tiles = (2 * b_tile * In_pad * 2        # layer-0 x block (bf16), 2 buffers
             + 2 * b_tile * Hp * 4          # hidden-in block, 2 buffers
             + 2 * b_tile * Hp * 4          # hidden-out block, 2 buffers
             + b_tile * In_pad * 2)         # carry scratch (bf16)
    need = int((weights + biases + tiles) * 1.25)
    # Floor gives the compiler room for its own scratch; cap keeps v7x (64 MiB
    # physical VMEM) safe.  TODO(synk): stream weights per layer if H ever
    # grows large enough that resident weights exceed this cap.
    return int(min(max(need, 16 * 1024 * 1024), 32 * 1024 * 1024))


def _gru_stack_call(seed_arr, x_pad, hidden_pad, wx_all, wh_all, bx_all, bh_all,
                    *, Hp: int, In_pad: int, num_layers: int, dropout: float,
                    b_tile: int):
    B_padded = x_pad.shape[0]
    n_btiles = B_padded // b_tile
    kernel = _make_gru_stack_kernel(Hp, dropout, num_layers)
    grid_spec = pltpu.PrefetchScalarGridSpec(
        num_scalar_prefetch=1,
        grid=(n_btiles, num_layers),
        in_specs=[
            # layer-0 input: one tile per batch-grid index
            pl.BlockSpec((b_tile, In_pad), lambda b, l, _s: (b, 0)),
            # previous hidden state for (layer l, batch tile b)
            pl.BlockSpec((1, b_tile, Hp), lambda b, l, _s: (l, b, 0)),
            # weights: resident for the whole grid (constant block index)
            pl.BlockSpec((num_layers, In_pad, 3 * Hp), lambda b, l, _s: (0, 0, 0)),
            pl.BlockSpec((num_layers, Hp, 3 * Hp), lambda b, l, _s: (0, 0, 0)),
            # biases: tiny, streamed per layer
            pl.BlockSpec((1, 1, 3 * Hp), lambda b, l, _s: (l, 0, 0)),
            pl.BlockSpec((1, 1, 3 * Hp), lambda b, l, _s: (l, 0, 0)),
        ],
        out_specs=pl.BlockSpec((1, b_tile, Hp), lambda b, l, _s: (l, b, 0)),
        scratch_shapes=[pltpu.VMEM((b_tile, In_pad), jnp.bfloat16)],
    )
    return pl.pallas_call(
        kernel,
        grid_spec=grid_spec,
        out_shape=jax.ShapeDtypeStruct((num_layers, B_padded, Hp), jnp.float32),
        compiler_params=pltpu.CompilerParams(
            # batch tiles are independent -> "parallel" (v7x megacore);
            # layers are sequentially dependent -> "arbitrary".
            dimension_semantics=("parallel", "arbitrary"),
            vmem_limit_bytes=_vmem_limit_bytes(b_tile, In_pad, Hp, num_layers),
        ),
    )(seed_arr, x_pad, hidden_pad, wx_all, wh_all, bx_all, bh_all)


def gru_forward(gru_packed, x, hidden_pad, *, H: int, Hp: int, In_pad: int,
                num_layers: int, dropout: float, seed: int, b_tile: int):
    """Mirrors GRU.forward(x, hidden) -> (hidden[-1].unsqueeze(1), hidden).

    `hidden_pad` stays lane/batch padded (L, B_padded, Hp) across calls; padded
    lanes stay zero; padded batch rows never mix with real rows.
    """
    wx_all, wh_all, bx_all, bh_all = gru_packed
    xs = jnp.squeeze(x, axis=1)          # never squeeze the batch dim
    B = xs.shape[0]
    B_padded = hidden_pad.shape[1]
    x_pad = jnp.zeros((B_padded, In_pad), jnp.bfloat16)
    x_pad = x_pad.at[:B, : xs.shape[1]].set(xs.astype(jnp.bfloat16))
    seed_arr = jnp.asarray([seed], jnp.int32)
    new_hidden = _gru_stack_call(
        seed_arr, x_pad, hidden_pad, wx_all, wh_all, bx_all, bh_all,
        Hp=Hp, In_pad=In_pad, num_layers=num_layers, dropout=dropout,
        b_tile=b_tile)
    return new_hidden[-1, :B, None, :H], new_hidden


# -----------------------------------------------------------------------------
# Parameter construction / packing
# -----------------------------------------------------------------------------
def pack_gru_params(gru_raw, input_size: int, H: int, num_layers: int):
    """Pack per-layer GRUCell params into the split, lane-padded layout.

    Returns (wx_all bf16 (L,In_pad,3*Hp), wh_all bf16 (L,Hp,3*Hp),
             bx_all f32 (L,1,3*Hp),       bh_all f32 (L,1,3*Hp)).
    Gate column blocks are [r | z | n], each Hp wide.
    TODO(synk): when 4*H <= 128 the per-gate Hp padding inflates weight bytes
    ~4x; a packed single-lane-group layout would cut weight DMA at tiny H.
    """
    Hp = _round_up(H, 128)
    In_pad = _round_up(max(input_size, H), 128)
    wx_all = jnp.zeros((num_layers, In_pad, 3 * Hp), jnp.float32)
    wh_all = jnp.zeros((num_layers, Hp, 3 * Hp), jnp.float32)
    bx_all = jnp.zeros((num_layers, 1, 3 * Hp), jnp.float32)
    bh_all = jnp.zeros((num_layers, 1, 3 * Hp), jnp.float32)
    for l, (wx, bx, wh, bh) in enumerate(gru_raw):
        in_dim = wx.shape[0]
        for g in range(3):
            wx_all = wx_all.at[l, :in_dim, g * Hp: g * Hp + H].set(
                wx[:, g * H: (g + 1) * H])
            wh_all = wh_all.at[l, :H, g * Hp: g * Hp + H].set(
                wh[:, g * H: (g + 1) * H])
            bx_all = bx_all.at[l, 0, g * Hp: g * Hp + H].set(bx[g * H:(g + 1) * H])
            bh_all = bh_all.at[l, 0, g * Hp: g * Hp + H].set(bh[g * H:(g + 1) * H])
    return (wx_all.astype(jnp.bfloat16), wh_all.astype(jnp.bfloat16),
            bx_all, bh_all)


class DiscConfig(NamedTuple):
    node_size: int
    fe_hidden_size: int
    fe_out_size: int
    mp_hidden_size: int
    mp_num_layers: int
    iters: int
    num_hits: int
    dropout: float
    alpha: float
    hidden_node_size: int
    wgan: bool


def init_discriminator_params(key, cfg: DiscConfig):
    H = cfg.mp_hidden_size
    hn = cfg.hidden_node_size
    fe_in = 2 * hn + 1                      # int_diffs=False
    gru_in = cfg.fe_out_size + hn
    ks = jax.random.split(key, 6 + 4 * cfg.mp_num_layers)
    u = lambda k, shp: jax.random.uniform(k, shp, jnp.float32, -0.1, 0.1)
    params = {
        "fe1_w": u(ks[0], (fe_in, cfg.fe_hidden_size)),
        "fe1_b": u(ks[1], (cfg.fe_hidden_size,)),
        "fe2_w": u(ks[2], (cfg.fe_hidden_size, cfg.fe_out_size)),
        "fe2_b": u(ks[3], (cfg.fe_out_size,)),
        "fn2_w": u(ks[4], (H, hn)),
        "fn2_b": u(ks[5], (hn,)),
    }
    gru_raw = []
    for l in range(cfg.mp_num_layers):
        in_dim = gru_in if l == 0 else H
        k0, k1, k2, k3 = ks[6 + 4 * l: 10 + 4 * l]
        gru_raw.append((u(k0, (in_dim, 3 * H)), u(k1, (3 * H,)),
                        u(k2, (H, 3 * H)), u(k3, (3 * H,))))
    (params["gru_wx"], params["gru_wh"],
     params["gru_bx"], params["gru_bh"]) = pack_gru_params(
        gru_raw, gru_in, H, cfg.mp_num_layers)
    return params, gru_raw


# -----------------------------------------------------------------------------
# Graph_Discriminator forward (JAX glue around the fused GRU kernel)
# -----------------------------------------------------------------------------
def _get_A(x, num_hits: int):
    bs, nh, hn = x.shape
    x1 = jnp.repeat(x, nh, axis=1)               # node i repeated nh times
    x2 = jnp.tile(x, (1, nh, 1))                 # node list tiled nh times
    dists = jnp.linalg.norm(x2[:, :, :2] - x1[:, :, :2] + 1e-12,
                            axis=2, keepdims=True)
    return jnp.concatenate([x1, x2, dists], axis=2).reshape(
        bs * nh * nh, 2 * hn + 1)


@functools.partial(jax.jit, static_argnames=("cfg",))
def discriminator_forward(params, x, *, cfg: DiscConfig):
    bs = x.shape[0]
    nh = cfg.num_hits
    hn = cfg.hidden_node_size
    H = cfg.mp_hidden_size
    Hp = _round_up(H, 128)
    gru_in = cfg.fe_out_size + hn
    In_pad = _round_up(max(gru_in, H), 128)
    B = bs * nh
    b_tile = _pick_b_tile(B)
    B_padded = _round_up(B, b_tile)

    gru_packed = (params["gru_wx"], params["gru_wh"],
                  params["gru_bx"], params["gru_bh"])
    hidden = jnp.zeros((cfg.mp_num_layers, B_padded, Hp), jnp.float32)  # initHidden
    x = jnp.pad(x, ((0, 0), (0, 0), (0, hn - cfg.node_size)))           # F.pad

    for it in range(cfg.iters):
        # TODO(synk): edge MLP (fe1/fe2) + neighbourhood sum left to XLA.
        A = _get_A(x, nh)
        A = jax.nn.leaky_relu(A @ params["fe1_w"] + params["fe1_b"], cfg.alpha)
        A = jax.nn.leaky_relu(A @ params["fe2_w"] + params["fe2_b"], cfg.alpha)
        A = A.reshape(bs, nh, nh, cfg.fe_out_size).sum(axis=2)
        x = jnp.concatenate([A, x], axis=2)                       # (bs, nh, gru_in)
        x = x.reshape(B, 1, gru_in)
        x, hidden = gru_forward(gru_packed, x, hidden,
                                H=H, Hp=Hp, In_pad=In_pad,
                                num_layers=cfg.mp_num_layers,
                                dropout=cfg.dropout, seed=it + 1,
                                b_tile=b_tile)
        x = jnp.tanh(x @ params["fn2_w"] + params["fn2_b"])       # (B, 1, hn)
        x = x.reshape(bs, nh, hn)

    out = jnp.mean(x[:, :, :1], axis=1)                           # (bs, 1)
    return out if cfg.wgan else jax.nn.sigmoid(out)


# -----------------------------------------------------------------------------
# Pure-JAX reference (no Pallas) for the correctness check (dropout == 0)
# -----------------------------------------------------------------------------
def _reference_forward(params, gru_raw, x, *, cfg: DiscConfig):
    bs = x.shape[0]
    nh = cfg.num_hits
    hn = cfg.hidden_node_size
    H = cfg.mp_hidden_size
    B = bs * nh

    def gru_cell(xi, hi, wx, bx, wh, bh):
        gx = jnp.dot(xi.astype(jnp.bfloat16), wx.astype(jnp.bfloat16),
                     preferred_element_type=jnp.float32) + bx
        gh = jnp.dot(hi.astype(jnp.bfloat16), wh.astype(jnp.bfloat16),
                     preferred_element_type=jnp.float32) + bh
        r = jax.nn.sigmoid(gx[:, :H] + gh[:, :H])
        z = jax.nn.sigmoid(gx[:, H:2 * H] + gh[:, H:2 * H])
        n = jnp.tanh(gx[:, 2 * H:] + r * gh[:, 2 * H:])
        return n + z * (hi - n)

    hidden = jnp.zeros((cfg.mp_num_layers, B, H), jnp.float32)
    x = jnp.pad(x, ((0, 0), (0, 0), (0, hn - cfg.node_size)))
    for _ in range(cfg.iters):
        A = _get_A(x, nh)
        A = jax.nn.leaky_relu(A @ params["fe1_w"] + params["fe1_b"], cfg.alpha)
        A = jax.nn.leaky_relu(A @ params["fe2_w"] + params["fe2_b"], cfg.alpha)
        A = A.reshape(bs, nh, nh, cfg.fe_out_size).sum(axis=2)
        xc = jnp.concatenate([A, x], axis=2).reshape(B, cfg.fe_out_size + hn)
        hidden = hidden.at[0].set(gru_cell(xc, hidden[0], *gru_raw[0]))
        for l in range(1, cfg.mp_num_layers):
            hidden = hidden.at[l].set(gru_cell(hidden[l - 1], hidden[l], *gru_raw[l]))
        xg = jnp.tanh(hidden[-1][:, None, :] @ params["fn2_w"] + params["fn2_b"])
        x = xg.reshape(bs, nh, hn)
    out = jnp.mean(x[:, :, :1], axis=1)
    return out if cfg.wgan else jax.nn.sigmoid(out)


if __name__ == "__main__":
    cfg = DiscConfig(node_size=3, fe_hidden_size=32, fe_out_size=24,
                     mp_hidden_size=32, mp_num_layers=3, iters=2, num_hits=8,
                     dropout=0.0, alpha=0.2, hidden_node_size=16, wgan=False)

    key = jax.random.PRNGKey(0)
    kp, kx = jax.random.split(key)
    params, gru_raw = init_discriminator_params(kp, cfg)
    x = jax.random.normal(kx, (2, cfg.num_hits, cfg.node_size), jnp.float32)

    out = discriminator_forward(params, x, cfg=cfg)
    out = jax.block_until_ready(out)
    assert out.shape == (2, 1)
    assert bool(jnp.all(jnp.isfinite(out)))

    ref = _reference_forward(params, gru_raw, x, cfg=cfg)
    assert jnp.allclose(out, ref, atol=2e-3, rtol=2e-3), (out, ref)

    print("KERNEL_OK")
</pallas_src>

<mosaic_0001>
module attributes {stable_mosaic.version = 11 : i64} {
  func.func @kernel(%arg0: i32, %arg1: i32, %arg2: memref<1xi32, #tpu.memory_space<smem>>, %arg3: memref<16x128xbf16, #tpu.memory_space<vmem>>, %arg4: memref<1x16x128xf32, #tpu.memory_space<vmem>>, %arg5: memref<3x128x384xbf16, #tpu.memory_space<vmem>>, %arg6: memref<3x128x384xbf16, #tpu.memory_space<vmem>>, %arg7: memref<1x1x384xf32, #tpu.memory_space<vmem>>, %arg8: memref<1x1x384xf32, #tpu.memory_space<vmem>>, %arg9: memref<1x16x128xf32, #tpu.memory_space<vmem>>, %arg10: memref<16x128xbf16, #tpu.memory_space<vmem>>) attributes {dimension_semantics = [#tpu.dimension_semantics<parallel>, #tpu.dimension_semantics<arbitrary>], iteration_bounds = array<i64: 1, 3>, scalar_prefetch = 1 : i64, scratch_operands = 1 : i64, tpu.core_type = #tpu.core_type<tc>, window_params = [{transform_indices = @transform_0, window_bounds = array<i64: 16, 128>}, {transform_indices = @transform_1, window_bounds = array<i64: 1, 16, 128>}, {pipeline_mode = #tpu.pipeline_mode<synchronous>, transform_indices = @transform_2, window_bounds = array<i64: 3, 128, 384>}, {pipeline_mode = #tpu.pipeline_mode<synchronous>, transform_indices = @transform_3, window_bounds = array<i64: 3, 128, 384>}, {transform_indices = @transform_4, window_bounds = array<i64: 1, 1, 384>}, {transform_indices = @transform_5, window_bounds = array<i64: 1, 1, 384>}, {transform_indices = @transform_6, window_bounds = array<i64: 1, 16, 128>}]} {
    %c0_i32 = arith.constant 0 : i32
    %0 = arith.cmpi eq, %arg1, %c0_i32 : i32
    %1 = arith.extui %0 : i1 to i32
    %c0_i32_0 = arith.constant 0 : i32
    %2 = arith.cmpi ne, %1, %c0_i32_0 : i32
    scf.if %2 {
      %c0_22 = arith.constant 0 : index
      %c0_23 = arith.constant 0 : index
      %53 = vector.load %arg3[%c0_22, %c0_23] : memref<16x128xbf16, #tpu.memory_space<vmem>>, vector<16x128xbf16>
      %c0_24 = arith.constant 0 : index
      %c0_25 = arith.constant 0 : index
      %54 = vector.load %arg10[%c0_24, %c0_25] : memref<16x128xbf16, #tpu.memory_space<vmem>>, vector<16x128xbf16>
      tpu.vector_store %arg10[%c0_24, %c0_25], %53 {strides = array<i32>} : memref<16x128xbf16, #tpu.memory_space<vmem>>, vector<16x128xbf16>,
    } else {
    }
    %c0 = arith.constant 0 : index
    %c0_1 = arith.constant 0 : index
    %c0_2 = arith.constant 0 : index
    %3 = vector.load %arg4[%c0, %c0_1, %c0_2] : memref<1x16x128xf32, #tpu.memory_space<vmem>>, vector<1x16x128xf32>
    %4 = vector.shape_cast %3 : vector<1x16x128xf32> to vector<16x128xf32>
    %c0_3 = arith.constant 0 : index
    %c0_4 = arith.constant 0 : index
    %5 = vector.load %arg10[%c0_3, %c0_4] : memref<16x128xbf16, #tpu.memory_space<vmem>>, vector<16x128xbf16>
    %6 = arith.index_cast %arg1 : i32 to index
    %c0_5 = arith.constant 0 : index
    %c0_6 = arith.constant 0 : index
    %7 = vector.load %arg5[%6, %c0_5, %c0_6] : memref<3x128x384xbf16, #tpu.memory_space<vmem>>, vector<1x128x384xbf16>
    %8 = vector.shape_cast %7 : vector<1x128x384xbf16> to vector<128x384xbf16>
    %cst = arith.constant dense<0.000000e+00> : vector<16x384xf32>
    %9 = tpu.matmul %5, %8, %cst {dimension_numbers = #tpu.dot_dimension_numbers<[1], [0], [0], [1], [0, 0, 1, 1], [], []>} : vector<16x128xbf16>, vector<128x384xbf16>, vector<16x384xf32> -> vector<16x384xf32>
    %c0_7 = arith.constant 0 : index
    %c0_8 = arith.constant 0 : index
    %c0_9 = arith.constant 0 : index
    %10 = vector.load %arg7[%c0_7, %c0_8, %c0_9] : memref<1x1x384xf32, #tpu.memory_space<vmem>>, vector<1x1x384xf32>
    %11 = vector.shape_cast %10 : vector<1x1x384xf32> to vector<1x384xf32>
    %12 = vector.broadcast %11 : vector<1x384xf32> to vector<16x384xf32>
    %13 = arith.addf %9, %12 : vector<16x384xf32>
    %14 = arith.truncf %4 : vector<16x128xf32> to vector<16x128xbf16>
    %15 = arith.index_cast %arg1 : i32 to index
    %c0_10 = arith.constant 0 : index
    %c0_11 = arith.constant 0 : index
    %16 = vector.load %arg6[%15, %c0_10, %c0_11] : memref<3x128x384xbf16, #tpu.memory_space<vmem>>, vector<1x128x384xbf16>
    %17 = vector.shape_cast %16 : vector<1x128x384xbf16> to vector<128x384xbf16>
    %cst_12 = arith.constant dense<0.000000e+00> : vector<16x384xf32>
    %18 = tpu.matmul %14, %17, %cst_12 {dimension_numbers = #tpu.dot_dimension_numbers<[1], [0], [0], [1], [0, 0, 1, 1], [], []>} : vector<16x128xbf16>, vector<128x384xbf16>, vector<16x384xf32> -> vector<16x384xf32>
    %c0_13 = arith.constant 0 : index
    %c0_14 = arith.constant 0 : index
    %c0_15 = arith.constant 0 : index
    %19 = vector.load %arg8[%c0_13, %c0_14, %c0_15] : memref<1x1x384xf32, #tpu.memory_space<vmem>>, vector<1x1x384xf32>
    %20 = vector.shape_cast %19 : vector<1x1x384xf32> to vector<1x384xf32>
    %21 = vector.broadcast %20 : vector<1x384xf32> to vector<16x384xf32>
    %22 = arith.addf %18, %21 : vector<16x384xf32>
    %23 = vector.extract_strided_slice %13 {offsets = [0, 0], sizes = [16, 128], strides = [1, 1]} : vector<16x384xf32> to vector<16x128xf32>
    %24 = vector.extract_strided_slice %22 {offsets = [0, 0], sizes = [16, 128], strides = [1, 1]} : vector<16x384xf32> to vector<16x128xf32>
    %25 = arith.addf %23, %24 : vector<16x128xf32>
    %26 = arith.negf %25 : vector<16x128xf32>
    %27 = math.exp %26 : vector<16x128xf32>
    %cst_16 = arith.constant 1.000000e+00 : f32
    %28 = vector.broadcast %cst_16 : f32 to vector<16x128xf32>
    %29 = arith.addf %28, %27 : vector<16x128xf32>
    %30 = arith.divf %28, %29 : vector<16x128xf32>
    %31 = vector.extract_strided_slice %13 {offsets = [0, 128], sizes = [16, 128], strides = [1, 1]} : vector<16x384xf32> to vector<16x128xf32>
    %32 = vector.extract_strided_slice %22 {offsets = [0, 128], sizes = [16, 128], strides = [1, 1]} : vector<16x384xf32> to vector<16x128xf32>
    %33 = arith.addf %31, %32 : vector<16x128xf32>
    %34 = arith.negf %33 : vector<16x128xf32>
    %35 = math.exp %34 : vector<16x128xf32>
    %cst_17 = arith.constant 1.000000e+00 : f32
    %36 = vector.broadcast %cst_17 : f32 to vector<16x128xf32>
    %37 = arith.addf %36, %35 : vector<16x128xf32>
    %38 = arith.divf %36, %37 : vector<16x128xf32>
    %39 = vector.extract_strided_slice %13 {offsets = [0, 256], sizes = [16, 128], strides = [1, 1]} : vector<16x384xf32> to vector<16x128xf32>
    %40 = vector.extract_strided_slice %22 {offsets = [0, 256], sizes = [16, 128], strides = [1, 1]} : vector<16x384xf32> to vector<16x128xf32>
    %41 = arith.mulf %30, %40 : vector<16x128xf32>
    %42 = arith.addf %39, %41 : vector<16x128xf32>
    %43 = math.tanh %42 : vector<16x128xf32>
    %44 = arith.subf %4, %43 : vector<16x128xf32>
    %45 = arith.mulf %38, %44 : vector<16x128xf32>
    %46 = arith.addf %43, %45 : vector<16x128xf32>
    %c0_18 = arith.constant 0 : index
    %c0_19 = arith.constant 0 : index
    %c0_20 = arith.constant 0 : index
    %47 = vector.load %arg9[%c0_18, %c0_19, %c0_20] : memref<1x16x128xf32, #tpu.memory_space<vmem>>, vector<1x16x128xf32>
    %48 = vector.shape_cast %47 : vector<1x16x128xf32> to vector<16x128xf32>
    %49 = vector.shape_cast %46 : vector<16x128xf32> to vector<1x16x128xf32>
    tpu.vector_store %arg9[%c0_18, %c0_19, %c0_20], %49 {strides = array<i32>} : memref<1x16x128xf32, #tpu.memory_space<vmem>>, vector<1x16x128xf32>,
    %c2_i32 = arith.constant 2 : i32
    %50 = arith.cmpi slt, %arg1, %c2_i32 : i32
    %51 = arith.extui %50 : i1 to i32
    %c0_i32_21 = arith.constant 0 : i32
    %52 = arith.cmpi ne, %51, %c0_i32_21 : i32
    scf.if %52 {
      %53 = arith.truncf %46 : vector<16x128xf32> to vector<16x128xbf16>
      %c0_22 = arith.constant 0 : index
      %c0_23 = arith.constant 0 : index
      %54 = vector.load %arg10[%c0_22, %c0_23] : memref<16x128xbf16, #tpu.memory_space<vmem>>, vector<16x128xbf16>
      tpu.vector_store %arg10[%c0_22, %c0_23], %53 {strides = array<i32>} : memref<16x128xbf16, #tpu.memory_space<vmem>>, vector<16x128xbf16>,
    } else {
    }
    return
  }
  func.func @transform_0(%arg0: i32, %arg1: i32, %arg2: memref<1xi32, #tpu.memory_space<smem>>) -> (i32, i32) {
    %c0_i32 = arith.constant 0 : i32
    %c0_i32_0 = arith.constant 0 : i32
    return %arg0, %c0_i32 : i32, i32
  }
  func.func @transform_1(%arg0: i32, %arg1: i32, %arg2: memref<1xi32, #tpu.memory_space<smem>>) -> (i32, i32, i32) {
    %c0_i32 = arith.constant 0 : i32
    %c0_i32_0 = arith.constant 0 : i32
    return %arg1, %arg0, %c0_i32 : i32, i32, i32
  }
  func.func @transform_2(%arg0: i32, %arg1: i32, %arg2: memref<1xi32, #tpu.memory_space<smem>>) -> (i32, i32, i32) {
    %c0_i32 = arith.constant 0 : i32
    %c0_i32_0 = arith.constant 0 : i32
    %c0_i32_1 = arith.constant 0 : i32
    %c0_i32_2 = arith.constant 0 : i32
    return %c0_i32, %c0_i32_0, %c0_i32_1 : i32, i32, i32
  }
  func.func @transform_3(%arg0: i32, %arg1: i32, %arg2: memref<1xi32, #tpu.memory_space<smem>>) -> (i32, i32, i32) {
    %c0_i32 = arith.constant 0 : i32
    %c0_i32_0 = arith.constant 0 : i32
    %c0_i32_1 = arith.constant 0 : i32
    %c0_i32_2 = arith.constant 0 : i32
    return %c0_i32, %c0_i32_0, %c0_i32_1 : i32, i32, i32
  }
  func.func @transform_4(%arg0: i32, %arg1: i32, %arg2: memref<1xi32, #tpu.memory_space<smem>>) -> (i32, i32, i32) {
    %c0_i32 = arith.constant 0 : i32
    %c0_i32_0 = arith.constant 0 : i32
    %c0_i32_1 = arith.constant 0 : i32
    return %arg1, %c0_i32, %c0_i32_0 : i32, i32, i32
  }
  func.func @transform_5(%arg0: i32, %arg1: i32, %arg2: memref<1xi32, #tpu.memory_space<smem>>) -> (i32, i32, i32) {
    %c0_i32 = arith.constant 0 : i32
    %c0_i32_0 = arith.constant 0 : i32
    %c0_i32_1 = arith.constant 0 : i32
    return %arg1, %c0_i32, %c0_i32_0 : i32, i32, i32
  }
  func.func @transform_6(%arg0: i32, %arg1: i32, %arg2: memref<1xi32, #tpu.memory_space<smem>>) -> (i32, i32, i32) {
    %c0_i32 = arith.constant 0 : i32
    %c0_i32_0 = arith.constant 0 : i32
    return %arg1, %arg0, %c0_i32 : i32, i32, i32
  }
}

</mosaic_0001>

<bundles_post_ra>
// kernel: discriminator_forward.2
= control target key start
LH: loop header
LB: loop body
LE: loop exit
PB: predicated region body
PF: predicated region fallthrough
CT: control target
= control target key end

     0   :  { %s1395_s23 = smov 0   ;;  %s1397_s24 = smov 0   ;;  %s1546_s0 = inlined_call_operand.<no memory space> [shape: s32[1], index: 0, kind: input, shape index: {}]   ;;  %s1547_s1 = inlined_call_operand.vmem [shape: bf16[16,128], index: 1, kind: input, shape index: {}]   ;;  %s1548_s2 = inlined_call_operand.vmem [shape: f32[3,16,128], index: 2, kind: input, shape index: {}]   ;;  %s1549_s3 = inlined_call_operand.vmem [shape: bf16[3,128,384], index: 3, kind: input, shape index: {}]   ;;  %s1550_s4 = inlined_call_operand.vmem [shape: bf16[3,128,384], index: 4, kind: input, shape index: {}]   ;;  %s1551_s5 = inlined_call_operand.vmem [shape: f32[3,1,384], index: 5, kind: input, shape index: {}]   ;;  %s1552_s6 = inlined_call_operand.vmem [shape: f32[3,1,384], index: 6, kind: input, shape index: {}]   ;;  %s1553_s7 = inlined_call_operand.vmem [shape: f32[3,16,128], index: 7, kind: output, shape index: {}]  }
   0x1   :  { %s1399_s25 = smov 0  }
   0x2 LB: > { %s27_s26 = sadd.s32 1, %s1346_s24  ;;  %p1077_p0 = scmp.ge.s32.totalorder %s1350_s25, 1  ;;  %s1350_s25 = sphi %s1399_s25, %s18_s25   ;;  %s1346_s24 = sphi %s1397_s24, %s1555_s24   ;;  %s1342_s23 = sphi %s1395_s23, %s1554_s23  }
   0x3   : > { %p28_p1 = scmp.ge.s32.totalorder %s27_s26, 3  ;;  %p264_p2 = scmp.lt.s32.totalorder %s1350_s25, 4 }
   0x5   : > { %s1557_s26 = smov (%p28_p1, %s27_s26), 0  ;;  %p265_p3 = pnand %p1077_p0, %p264_p2 }
   0x6   : > { %p322_p4 = scmp.lt.s32.totalorder (!%p265_p3), %s1342_s23, 2  ;;  %p1082_p5 = scmp.ne.s32.totalorder (!%p265_p3), %s1342_s23, 0 }
   0x7   : > { %268 = sbr.rel (%p265_p3) target bundleno = 356 (0x164), region = 44 }
   0xe   : > { %s323_s27 = scalar_select %p322_p4, %s1342_s23, 2 }
   0xf   : > { %353 = sbr.rel (%p1082_p5) target bundleno = 22 (0x16), region = 48  ;;  %v1243_v0 = vld [vmem:[%s1547_s1] sm:$0xff] (!%p1082_p5)  }
  0x10   : > { %s1141_s28 = sshll.u32 %s323_s27, 4  ;;  %s1215_s29 = smul.u32 3, %s323_s27  ;;  %362 = vst [vmem:[#allocation2] sm:$0xff] (!%p1082_p5), %v1243_v0 }
  0x11   : > { %s1420_s9 = scalar_lea.vmem %s1548_s2, %s1141_s28  ;;  %s1425_s12 = scalar_lea.vmem %s1553_s7, %s1141_s28 }
  0x12   : > { %s1430_s15 = scalar_lea.vmem %s1551_s5, %s1215_s29  ;;  %s1435_s18 = scalar_lea.vmem %s1552_s6, %s1215_s29 }
  0x16 PF: > { %s1143_s21 = smul.u32 192, %s1342_s23  ;;  %v1352_v1 = vmov 0.0   ;;  %v1353_v2 = vmov 0   ;;  %vm1354_vm0 = vmmov 0   ;;  %v1516_v48 = vld [vmem:[%s1420_s9] sm:$0xff]  ;;  %v1520_v50 = vld [vmem:[%s1420_s9 + $0x8] sm:$0xff]  ;;  %v403_v59 = vlaneseq }
  0x17   : > { %1163 = vmatprep.subr.bf16.mxu1 %v1352_v1  ;;  %578 = vmatprep.mubr.bf16.mxu0 %v1353_v2  ;;  %v365_v26 = vld [vmem:[#allocation2] sm:$0xff]  ;;  %v630_v52 = vpack.c.bf16 %v1520_v50, %v1516_v48  ;;  %p1138_p6 = scmp.ge.s32.totalorder %s1342_s23, 2 }
  0x18   : > { %s1447_s27 = scalar_lea.vmem %s1549_s3, %s1143_s21  ;;  %1179 = vmatprep.mubr.msk.bf16.mxu1 %vm1354_vm0, %v1352_v1  ;;  %s1466_s30 = scalar_lea.vmem %s1550_s4, %s1143_s21  ;;  %v404_v60 = vshrl.u32 %v403_v59, 7  ;;  %v665_v62 = vld [vmem:[%s1435_s18] sm:$0x7] }
  0x19   : > { %v1244_v3 = vld [vmem:[%s1447_s27 + $0x4] ss:$12 sps:$4 sm:$0xff]   ;;  %v1246_v4 = vld [vmem:[%s1447_s27] ss:$12 sps:$4 sm:$0xff]   ;;  %v1247_v5 = vld [vmem:[%s1447_s27 + $0x1c] ss:$12 sps:$4 sm:$0xff]  }
  0x1a   : > { %546 = vmatprep.subr.bf16.mxu0 %v1244_v3  ;;  %v1249_v6 = vld [vmem:[%s1447_s27 + $0x18] ss:$12 sps:$4 sm:$0xff]   ;;  %v1250_v7 = vld [vmem:[%s1447_s27 + $0x34] ss:$12 sps:$4 sm:$0xff]   ;;  %v1252_v8 = vld [vmem:[%s1447_s27 + $0x30] ss:$12 sps:$4 sm:$0xff]  }
  0x1b   : > { %547 = vmatpush1.bf16.msra.mxu0 %v1246_v4  ;;  %v1253_v9 = vld [vmem:[%s1447_s27 + $0x4c] ss:$12 sps:$4 sm:$0xff]   ;;  %v1264_v10 = vld [vmem:[%s1447_s27 + $0x8] ss:$12 sps:$4 sm:$0xff]   ;;  %v1256_v12 = vld [vmem:[%s1447_s27 + $0x64] ss:$12 sps:$4 sm:$0xff]  }
  0x1c   : > { %548 = vmatprep.subr.bf16.mxu0 %v1247_v5  ;;  %v1255_v11 = vld [vmem:[%s1447_s27 + $0x48] ss:$12 sps:$4 sm:$0xff]   ;;  %1164 = vmatpush3.bf16.msra.mxu1 %v1264_v10  ;;  %v1268_v13 = vld [vmem:[%s1447_s27 + $0x20] ss:$12 sps:$4 sm:$0xff]   ;;  %v1270_v15 = vld [vmem:[%s1447_s27 + $0x38] ss:$12 sps:$4 sm:$0xff]  }
  0x1d   : > { %1165 = vmatprep.subr.bf16.mxu1 %v1352_v1  ;;  %v1258_v14 = vld [vmem:[%s1447_s27 + $0x60] ss:$12 sps:$4 sm:$0xff]   ;;  %v1259_v16 = vld [vmem:[%s1447_s27 + $0x7c] ss:$12 sps:$4 sm:$0xff]   ;;  %v1261_v17 = vld [vmem:[%s1447_s27 + $0x78] ss:$12 sps:$4 sm:$0xff]  }
  0x1e   : > { %v1274_v18 = vld [vmem:[%s1447_s27 + $0x50] ss:$12 sps:$4 sm:$0xff]   ;;  %v1262_v19 = vld [vmem:[%s1447_s27 + $0x94] ss:$12 sps:$4 sm:$0xff]   ;;  %v1266_v22 = vld [vmem:[%s1447_s27 + $0xac] ss:$12 sps:$4 sm:$0xff]  }
  0x1f   : > { %549 = vmatpush1.bf16.msra.mxu0 %v1249_v6  ;;  %v1265_v20 = vld [vmem:[%s1447_s27 + $0x90] ss:$12 sps:$4 sm:$0xff]   ;;  %v1278_v21 = vld [vmem:[%s1447_s27 + $0x68] ss:$12 sps:$4 sm:$0xff]   ;;  %v1282_v24 = vld [vmem:[%s1447_s27 + $0x80] ss:$12 sps:$4 sm:$0xff]  }
  0x20   : > { %550 = vmatprep.subr.bf16.mxu0 %v1250_v7  ;;  %1166 = vmatpush3.bf16.msra.mxu1 %v1268_v13  ;;  %v1269_v23 = vld [vmem:[%s1447_s27 + $0xa8] ss:$12 sps:$4 sm:$0xff]   ;;  %v1273_v25 = vld [vmem:[%s1466_s30 + $0x4] ss:$12 sps:$4 sm:$0xff]   ;;  %v1271_v27 = vld [vmem:[%s1466_s30] ss:$12 sps:$4 sm:$0xff]  }
  0x21   : > { %1167 = vmatprep.subr.bf16.mxu1 %v1352_v1  ;;  %v1286_v28 = vld [vmem:[%s1447_s27 + $0x98] ss:$12 sps:$4 sm:$0xff]   ;;  %v1277_v29 = vld [vmem:[%s1466_s30 + $0x1c] ss:$12 sps:$4 sm:$0xff]   ;;  %v1281_v32 = vld [vmem:[%s1466_s30 + $0x34] ss:$12 sps:$4 sm:$0xff]  }
  0x22   : > { %v1275_v30 = vld [vmem:[%s1466_s30 + $0x18] ss:$12 sps:$4 sm:$0xff]   ;;  %v1290_v31 = vld [vmem:[%s1447_s27 + $0xb0] ss:$12 sps:$4 sm:$0xff]   ;;  %v1297_v34 = vld [vmem:[%s1466_s30 + $0x8] ss:$12 sps:$4 sm:$0xff]  }
  0x23   : > { %551 = vmatpush1.bf16.msra.mxu0 %v1252_v8  ;;  %v1279_v33 = vld [vmem:[%s1466_s30 + $0x30] ss:$12 sps:$4 sm:$0xff]   ;;  %v1285_v35 = vld [vmem:[%s1466_s30 + $0x4c] ss:$12 sps:$4 sm:$0xff]   ;;  %v1283_v36 = vld [vmem:[%s1466_s30 + $0x48] ss:$12 sps:$4 sm:$0xff]  }
  0x24   : > { %552 = vmatprep.subr.bf16.mxu0 %v1253_v9  ;;  %1168 = vmatpush3.bf16.msra.mxu1 %v1270_v15  ;;  %v1301_v37 = vld [vmem:[%s1466_s30 + $0x20] ss:$12 sps:$4 sm:$0xff]   ;;  %v1289_v38 = vld [vmem:[%s1466_s30 + $0x64] ss:$12 sps:$4 sm:$0xff]   ;;  %v1293_v41 = vld [vmem:[%s1466_s30 + $0x7c] ss:$12 sps:$4 sm:$0xff]  }
  0x25   : > { %1169 = vmatprep.subr.bf16.mxu1 %v1352_v1  ;;  %v1287_v39 = vld [vmem:[%s1466_s30 + $0x60] ss:$12 sps:$4 sm:$0xff]   ;;  %v1302_v40 = vld [vmem:[%s1466_s30 + $0x38] ss:$12 sps:$4 sm:$0xff]   ;;  %v1303_v43 = vld [vmem:[%s1466_s30 + $0x50] ss:$12 sps:$4 sm:$0xff]  }
  0x26   : > { %v1291_v42 = vld [vmem:[%s1466_s30 + $0x78] ss:$12 sps:$4 sm:$0xff]   ;;  %v1296_v44 = vld [vmem:[%s1466_s30 + $0x94] ss:$12 sps:$4 sm:$0xff]   ;;  %v1294_v45 = vld [vmem:[%s1466_s30 + $0x90] ss:$12 sps:$4 sm:$0xff]  }
  0x27   : > { %553 = vmatpush1.bf16.msra.mxu0 %v1255_v11  ;;  %v1304_v46 = vld [vmem:[%s1466_s30 + $0x68] ss:$12 sps:$4 sm:$0xff]   ;;  %v1300_v47 = vld [vmem:[%s1466_s30 + $0xac] ss:$12 sps:$4 sm:$0xff]   ;;  %v1307_v54 = vld [vmem:[%s1466_s30 + $0xb0] ss:$12 sps:$4 sm:$0xff]  }
  0x28   : > { %554 = vmatprep.subr.bf16.mxu0 %v1256_v12  ;;  %1170 = vmatpush3.bf16.msra.mxu1 %v1274_v18  ;;  %v1298_v49 = vld [vmem:[%s1466_s30 + $0xa8] ss:$12 sps:$4 sm:$0xff]   ;;  %v1305_v51 = vld [vmem:[%s1466_s30 + $0x80] ss:$12 sps:$4 sm:$0xff]   ;;  %v1306_v53 = vld [vmem:[%s1466_s30 + $0x98] ss:$12 sps:$4 sm:$0xff]  }
  0x29   : > { %1171 = vmatprep.subr.bf16.mxu1 %v1352_v1  ;;  %v405_v61 = vsub.s32 0, %v404_v60  ;;  %v401_v63 = vld [vmem:[%s1430_s15] sm:$0x7]  ;;  %v409_v4 = vsub.s32 1, %v404_v60 }
  0x2b   : > { %555 = vmatpush1.bf16.msra.mxu0 %v1258_v14  ;;  %v406_v0 = vrot.slane %v401_v63, %v405_v61  ;;  %v410_v7 = vrot.slane %v401_v63, %v409_v4  ;;  %v674_v8 = vrot.slane %v665_v62, %v409_v4 }
  0x2c   : > { %556 = vmatprep.subr.bf16.mxu0 %v1259_v16  ;;  %1172 = vmatpush3.bf16.msra.mxu1 %v1278_v21 }
  0x2d   : > { %1173 = vmatprep.subr.bf16.mxu1 %v1352_v1  ;;  %v1205_v13 = vadd.f32 %v674_v8, %v410_v7 }
  0x2f   : > { %557 = vmatpush1.bf16.msra.mxu0 %v1261_v17 }
  0x30   : > { %558 = vmatprep.subr.bf16.mxu0 %v1262_v19  ;;  %1174 = vmatpush3.bf16.msra.mxu1 %v1282_v24 }
  0x31   : > { %1175 = vmatprep.subr.bf16.mxu1 %v1352_v1 }
  0x33   : > { %559 = vmatpush1.bf16.msra.mxu0 %v1265_v20 }
  0x34   : > { %560 = vmatprep.subr.bf16.mxu0 %v1266_v22  ;;  %1176 = vmatpush3.bf16.msra.mxu1 %v1286_v28 }
  0x35   : > { %1177 = vmatprep.subr.bf16.mxu1 %v1352_v1 }
  0x37   : > { %561 = vmatpush1.bf16.msra.mxu0 %v1269_v23 }
  0x38   : > { %810 = vmatprep.subr.bf16.mxu0 %v1273_v25  ;;  %1178 = vmatpush3.bf16.msra.mxu1 %v1290_v31 }
  0x39   : > { %1183 = vmatprep.subr.bf16.mxu1 %v1352_v1 }
  0x3a   : > { %579 = vmatmul.mubr.bf16.vlgmr.msra.gmra.mrb[0].mxu0 %v365_v26 }
  0x3b   : > { %811 = vmatpush1.bf16.msra.mxu0 %v1271_v27  ;;  %842 = vmatprep.mubr.bf16.mxu0 %v1353_v2  ;;  %v670_v2 = vrot.slane %v665_v62, %v405_v61  ;;  %v413_v27 = vsub.s32 2, %v404_v60 }
  0x3c   : > { %812 = vmatprep.subr.bf16.mxu0 %v1277_v29  ;;  %1180 = vmatmul.mubr.bf16.vlgmr.msra.gmra.mrb[0].mxu1 %v365_v26 }
  0x3d   : > { %1184 = vmatpush3.bf16.msra.mxu1 %v1297_v34  ;;  %1199 = vmatprep.mubr.msk.bf16.mxu1 %vm1354_vm0, %v1352_v1  ;;  %v1203_v3 = vadd.f32 %v670_v2, %v406_v0  ;;  %v678_v28 = vrot.slane %v665_v62, %v413_v27  ;;  %v414_v29 = vrot.slane %v401_v63, %v413_v27 }
  0x3e   : > { %1185 = vmatprep.subr.bf16.mxu1 %v1352_v1 }
  0x3f   : > { %813 = vmatpush1.bf16.msra.mxu0 %v1275_v30 }
  0x40   : > { %814 = vmatprep.subr.bf16.mxu0 %v1281_v32 }
  0x41   : > { %1186 = vmatpush3.bf16.msra.mxu1 %v1301_v37 }
  0x42   : > { %1187 = vmatprep.subr.bf16.mxu1 %v1352_v1 }
  0x43   : > { %815 = vmatpush1.bf16.msra.mxu0 %v1279_v33 }
  0x44   : > { %816 = vmatprep.subr.bf16.mxu0 %v1285_v35 }
  0x45   : > { %1188 = vmatpush3.bf16.msra.mxu1 %v1302_v40 }
  0x46   : > { %1189 = vmatprep.subr.bf16.mxu1 %v1352_v1 }
  0x47   : > { %817 = vmatpush1.bf16.msra.mxu0 %v1283_v36 }
  0x48   : > { %818 = vmatprep.subr.bf16.mxu0 %v1289_v38 }
  0x49   : > { %1190 = vmatpush3.bf16.msra.mxu1 %v1303_v43 }
  0x4a   : > { %1191 = vmatprep.subr.bf16.mxu1 %v1352_v1 }
  0x4b   : > { %819 = vmatpush1.bf16.msra.mxu0 %v1287_v39 }
  0x4c   : > { %820 = vmatprep.subr.bf16.mxu0 %v1293_v41 }
  0x4d   : > { %1192 = vmatpush3.bf16.msra.mxu1 %v1304_v46 }
  0x4e   : > { %1193 = vmatprep.subr.bf16.mxu1 %v1352_v1 }
  0x4f   : > { %821 = vmatpush1.bf16.msra.mxu0 %v1291_v42 }
  0x50   : > { %822 = vmatprep.subr.bf16.mxu0 %v1296_v44 }
  0x51   : > { %1194 = vmatpush3.bf16.msra.mxu1 %v1305_v51 }
  0x52   : > { %1195 = vmatprep.subr.bf16.mxu1 %v1352_v1 }
  0x53   : > { %823 = vmatpush1.bf16.msra.mxu0 %v1294_v45 }
  0x54   : > { %824 = vmatprep.subr.bf16.mxu0 %v1300_v47 }
  0x55   : > { %1196 = vmatpush3.bf16.msra.mxu1 %v1306_v53 }
  0x56   : > { %1197 = vmatprep.subr.bf16.mxu1 %v1352_v1 }
  0x57   : > { %825 = vmatpush1.bf16.msra.mxu0 %v1298_v49 }
  0x59   : > { %1198 = vmatpush3.bf16.msra.mxu1 %v1307_v54 }
  0x5a   : > { %843 = vmatmul.mubr.bf16.vlgmr.msra.gmra.mrb[0].mxu0 %v630_v52 }
  0x5c   : > { %1200 = vmatmul.mubr.bf16.vlgmr.msra.gmra.mrb[4].mxu1 %v630_v52 }
 0x10f   : > { %v623_v55 = vpop.f32.mrb[0].mxu1 }
 0x110   : > { %v1181_v56 = vpop.f32.mrb[1].mxu1  ;;  %v624_v34 = vadd.f32 %v623_v55, %v414_v29 }
 0x111   : > { %v626_v57 = vpop.f32.mrb[2].mxu1 }
 0x112   : > { %v1182_v58 = vpop.f32.mrb[3].mxu1  ;;  %v627_v39 = vadd.f32 %v626_v57, %v414_v29 }
 0x12d   : > { %v844_v5 = vpop.f32.mrb[0].mxu0 }
 0x12e   : > { %v1204_v6 = vadd.f32 %v1203_v3, %v844_v5  ;;  %v846_v1 = vpop.f32.mrb[1].mxu0 }
 0x12f   : > { %v848_v9 = vpop.f32.mrb[2].mxu0  ;;  %v887_v15 = vpop.f32.mrb[4].mxu1  ;;  %v1206_v16 = vadd.f32 %v1205_v13, %v846_v1 }
 0x130   : > { %v1134_v10 = vmul.f32 -1.442695, %v1204_v6  ;;  %v1208_v11 = vadd.f32 %v1203_v3, %v848_v9  ;;  %v850_v12 = vpop.f32.mrb[3].mxu0  ;;  %v1201_v17 = vpop.f32.mrb[5].mxu1  ;;  %v888_v30 = vadd.f32 %v887_v15, %v678_v28 }
 0x131   : > { %v890_v18 = vpop.f32.mrb[6].mxu1  ;;  %v1210_v19 = vadd.f32 %v1205_v13, %v850_v12  ;;  %v1136_v21 = vmul.f32 -1.442695, %v1206_v16 }
 0x132   : > { %1308 = vpow2.f32 %v1134_v10  ;;  %v1135_v14 = vmul.f32 -1.442695, %v1208_v11  ;;  %v1202_v20 = vpop.f32.mrb[7].mxu1  ;;  %v891_v36 = vadd.f32 %v890_v18, %v678_v28 }
 0x133   : > { %v1137_v23 = vmul.f32 -1.442695, %v1210_v19 }
 0x134   : > { %1310 = vpow2.f32 %v1135_v14 }
 0x135   : > { %1312 = vpow2.f32 %v1136_v21 }
 0x13c   : > { %v1309_v22 = vpop.eup %1308 }
 0x13d   : > { %v902_v24 = vadd.f32 1.0, %v1309_v22 }
 0x13e   : > { %v1311_v25 = vpop.eup %1310 }
 0x13f   : > { %1314 = vrcp.f32 %v902_v24  ;;  %v903_v26 = vadd.f32 1.0, %v1311_v25  ;;  %v1313_v31 = vpop.eup %1312 }
 0x140   : > { %1316 = vpow2.f32 %v1137_v23  ;;  %v916_v38 = vadd.f32 1.0, %v1313_v31 }
 0x141   : > { %1318 = vrcp.f32 %v903_v26 }
 0x149   : > { %v1315_v32 = vpop.eup %1314 }
 0x14a   : > { %v1317_v33 = vpop.eup %1316  ;;  %v922_v35 = vmul.f32 %v1315_v32, %v888_v30 }
 0x14b   : > { %v1319_v37 = vpop.eup %1318  ;;  %v917_v42 = vadd.f32 1.0, %v1317_v33 }
 0x14c   : > { %v924_v40 = vadd.f32 %v922_v35, %v624_v34  ;;  %v923_v41 = vmul.f32 %v1319_v37, %v891_v36 }
 0x14e   : > { %1320 = vtanh.f32 %v924_v40  ;;  %v925_v43 = vadd.f32 %v923_v41, %v627_v39 }
 0x14f   : > { %1322 = vrcp.f32 %v916_v38 }
 0x150   : > { %1324 = vtanh.f32 %v925_v43 }
 0x151   : > { %1326 = vrcp.f32 %v917_v42 }
 0x158   : > { %v1321_v44 = vpop.eup %1320 }
 0x159   : > { %v1323_v45 = vpop.eup %1322  ;;  %v928_v46 = vsub.f32 %v1516_v48, %v1321_v44 }
 0x15a   : > { %v1325_v47 = vpop.eup %1324 }
 0x15b   : > { %v930_v49 = vmul.f32 %v1323_v45, %v928_v46  ;;  %v929_v51 = vsub.f32 %v1520_v50, %v1325_v47  ;;  %v1327_v52 = vpop.eup %1326  ;;  %939 = sbr.rel (%p1138_p6) target bundleno = 356 (0x164), region = 52 }
 0x15d   : > { %v932_v53 = vadd.f32 %v1321_v44, %v930_v49  ;;  %v931_v54 = vmul.f32 %v1327_v52, %v929_v51 }
 0x15f   : > { %934 = vst [vmem:[%s1425_s12] sm:$0xff] %v932_v53  ;;  %v933_v55 = vadd.f32 %v1325_v47, %v931_v54 }
 0x161   : > { %935 = vst [vmem:[%s1425_s12 + $0x8] sm:$0xff] %v933_v55  ;;  %v940_v56 = vpack.c.bf16 (!%p1138_p6), %v933_v55, %v932_v53 }
 0x163   : > { %941 = vst [vmem:[#allocation2] sm:$0xff] %v940_v56 }
 0x164 PF: > { %s18_s25 = sadd.s32 1, %s1350_s25   ;;  %s1554_s23 = smov %s1346_s24 }
 0x165   : > { %p15_p7 = scmp.ge.s32.totalorder %s18_s25, 5   ;;  %s1555_s24 = smov %s1557_s26 }
 0x167   :  { %17 = sbr.rel (!%p15_p7) target bundleno = 2 (0x2), region = 93 }

</bundles_post_ra>
